<compile_context>
chip_gen: v6e
topology: v6e:2x2x1
jax: 0.10.0
libtpu: 0.0.40
codegen_flags: <defaults>
</compile_context>

<pallas_src>
import functools

import jax
import jax.numpy as jnp
from jax.experimental import pallas as pl
from jax.experimental.pallas import tpu as pltpu

LANE = 128      # last-dim alignment (vreg lane width)


def _round_up(n, m):
    return ((n + m - 1) // m) * m


def _chip_info():
    """Best-effort TPU generation detection (never raises)."""
    kind = ""
    try:
        kind = jax.devices()[0].device_kind.lower()
    except Exception:
        pass
    is_v7 = "7" in kind
    is_v6 = ("v6" in kind) or ("6e" in kind) or ("6 lite" in kind)
    is_v5 = ("v5" in kind) or ("5e" in kind) or ("5 lite" in kind) or ("5p" in kind)
    return dict(
        kind=kind,
        num_tc=2 if is_v7 else 1,                       # TensorCores per chip
        vmem_cap=(64 << 20) if is_v7 else (128 << 20),  # physical VMEM per TC
        default_scoped=(16 << 20) if is_v5 else (32 << 20),
        prefer_bf16=(is_v6 or is_v7),                   # bf16-native MXU rate
    )


def pad_params(params, compute_dtype=None):
    """Pad/cast weights & biases ONCE (hoisted out of the per-call forward).

    params: flat list [w0, b0, ..., w_out, b_out] with weights stored as
    [in, out] (transposed w.r.t. torch's [out, in]).  Weights are cast to
    `compute_dtype` and lane-padded to multiples of 128; biases stay f32.
    Zero padding keeps the math exact: padded hidden units are ReLU(0+0)=0
    and contribute nothing downstream; padded logit columns are sliced off.
    """
    if compute_dtype is None:
        compute_dtype = jnp.bfloat16 if _chip_info()["prefer_bf16"] else jnp.float32
    padded = []
    for i in range(len(params) // 2):
        w, b = params[2 * i], params[2 * i + 1]
        din, dout = w.shape
        din_p, dout_p = _round_up(din, LANE), _round_up(dout, LANE)
        w_p = jnp.pad(w.astype(compute_dtype),
                      ((0, din_p - din), (0, dout_p - dout)))
        b_p = jnp.pad(b.astype(jnp.float32).reshape(1, -1),
                      ((0, 0), (0, dout_p - dout)))
        padded += [w_p, b_p]
    return padded


def mlp_kernel(x_ref, *refs, compute_dtype):
    """Fused MLP forward: all Linear+ReLU layers, final Linear, sigmoid.

    refs = (w0, b0, w1, b1, ..., w_out, b_out, o_ref)
    Weights are [in_p, out_p] in `compute_dtype`; biases are [1, out_p] f32.
    All dims are lane/sublane padded by the wrapper, so every dot is a
    full-width MXU op and the output store is lane-dense (unmasked vst).
    """
    out_ref = refs[-1]
    param_refs = refs[:-1]
    n_pairs = len(param_refs) // 2

    h = x_ref[...]                                     # [bt, d_feature_p], compute_dtype

    # Hidden layers: Linear -> ReLU (nn.Dropout == identity in eval mode).
    for i in range(n_pairs - 1):
        w = param_refs[2 * i][...]                     # compute_dtype
        b = param_refs[2 * i + 1][...]                 # f32
        acc = jnp.dot(h, w, preferred_element_type=jnp.float32) + b
        acc = jnp.maximum(acc, 0.0)                    # bias-add/ReLU in f32 (v5e-safe)
        h = acc.astype(compute_dtype)                  # downcast only at the next MXU input
    # TODO(synk): nn.Dropout omitted (identity in eval mode); training-mode
    # dropout would need pltpu.prng_seed + pltpu.stateful_bernoulli masking.

    # Output layer: Linear -> sigmoid.
    logits = jnp.dot(h, param_refs[-2][...],
                     preferred_element_type=jnp.float32) + param_refs[-1][...]
    out_ref[...] = jax.nn.sigmoid(logits).astype(out_ref.dtype)


def mlp_forward(x, padded_params, n_classes, *, batch_tile=1024,
                out_dtype=jnp.float32, vmem_limit_bytes=None,
                slice_output=True):
    """x: [B, d_feature].  padded_params: output of `pad_params` (padded/cast
    once at init; no per-call weight traffic beyond the kernel's own DMA)."""
    info = _chip_info()
    compute_dtype = padded_params[0].dtype             # set at pad_params time

    B, d_feature = x.shape
    d_feature_p = padded_params[0].shape[0]
    n_classes_p = padded_params[-1].shape[1]

    dsize = jnp.dtype(compute_dtype).itemsize
    osize = jnp.dtype(out_dtype).itemsize
    # bf16 packs 2 rows / sublane: align the batch tile to the native tile.
    sub = 16 if dsize == 2 else (32 if dsize == 1 else 8)

    # ---- VMEM budget (weights resident & single-buffered) ------------------
    weight_bytes = sum(int(p.size) * p.dtype.itemsize for p in padded_params)
    max_dim_p = max(max(p.shape) for p in padded_params[0::2] + [padded_params[0]])
    per_row = (2 * d_feature_p * dsize            # double-buffered x tile
               + 2 * n_classes_p * osize          # double-buffered out tile
               + 2 * max_dim_p * (4 + dsize))     # live h (compute) + f32 acc
    budget = int(0.70 * info["vmem_cap"])
    avail = max(budget - weight_bytes, 1 << 20)
    bt_cap = max(sub, (avail // per_row) // sub * sub)
    # TODO(synk): if weight_bytes exceeds the VMEM budget (very large d_hidden /
    # n_layers), a streamed-weights path (memory_space=pl.ANY +
    # pltpu.emit_pipeline per layer) would be needed instead of all-resident.

    # ---- Batch tiling -------------------------------------------------------
    bt = min(batch_tile, bt_cap, _round_up(B, sub))
    bt = max(sub, (bt // sub) * sub)
    # Split into >=2 steps only on multi-TC chips (v7x): on single-TC v5e/v6e
    # the grid is a sequential loop and splitting is pure per-step overhead.
    if info["num_tc"] >= 2 and bt >= B and B >= 2 * sub:
        bt = _round_up(pl.cdiv(B, info["num_tc"]), sub)
    B_p = _round_up(B, bt)
    grid_n = B_p // bt
    if info["num_tc"] >= 2 and grid_n > 1 and grid_n % info["num_tc"] != 0:
        # Even out the grid across TensorCores; never raises per-core steps.
        grid_n = _round_up(grid_n, info["num_tc"])
        B_p = grid_n * bt

    # ---- Pad the activations (cheap; weights were padded once at init) -----
    x_p = jnp.pad(x.astype(compute_dtype),
                  ((0, B_p - B), (0, d_feature_p - d_feature)))

    # Batch dim of x / out is tiled; parameters are full-array, grid-invariant
    # blocks held resident in VMEM with a single buffer.
    x_spec = pl.BlockSpec((bt, d_feature_p), lambda i: (i, 0))
    param_specs = [pl.BlockSpec(p.shape, lambda i: (0, 0),
                                pipeline_mode=pl.Buffered(1))
                   for p in padded_params]
    out_spec = pl.BlockSpec((bt, n_classes_p), lambda i: (i, 0))

    # ---- Compiler params: explicit VMEM limit when the default scoped limit
    #      (16 MiB v5e / 32 MiB v6e,v7x) would be exceeded --------------------
    needed = weight_bytes + bt * per_row + (4 << 20)
    if vmem_limit_bytes is None and needed > info["default_scoped"]:
        vmem_limit_bytes = min(int(needed * 1.25), int(0.85 * info["vmem_cap"]))
    compiler_kwargs = dict(dimension_semantics=("parallel",))
    if vmem_limit_bytes is not None:
        compiler_kwargs["vmem_limit_bytes"] = int(vmem_limit_bytes)

    out_p = pl.pallas_call(
        functools.partial(mlp_kernel, compute_dtype=compute_dtype),
        out_shape=jax.ShapeDtypeStruct((B_p, n_classes_p), out_dtype),
        grid_spec=pltpu.PrefetchScalarGridSpec(
            num_scalar_prefetch=0,
            grid=(grid_n,),
            in_specs=[x_spec] + param_specs,
            out_specs=out_spec,
        ),
        compiler_params=pltpu.CompilerParams(**compiler_kwargs),
    )(x_p, *padded_params)

    if not slice_output:
        return out_p                       # lane-padded (B_p, n_classes_p)
    return out_p[:B, :n_classes]


def init_params(key, d_feature, d_hidden, n_layers, n_classes):
    """Deterministic parameter init.  Weights stored as [in, out]."""
    dims = [(d_feature, d_hidden)] + [(d_hidden, d_hidden)] * n_layers \
         + [(d_hidden, n_classes)]
    params = []
    for (din, dout) in dims:
        key, kw, kb = jax.random.split(key, 3)
        bound = 1.0 / jnp.sqrt(din)
        w = jax.random.uniform(kw, (din, dout), jnp.float32, -bound, bound)
        b = jax.random.uniform(kb, (1, dout), jnp.float32, -bound, bound)
        params += [w, b]
    return params


def mlp_reference(x, params):
    """Plain-JAX reference for validation."""
    n_pairs = len(params) // 2
    h = x
    for i in range(n_pairs - 1):
        h = jnp.maximum(h @ params[2 * i] + params[2 * i + 1], 0.0)
    logits = h @ params[-2] + params[-1]
    return jax.nn.sigmoid(logits)


if __name__ == "__main__":
    # Small, forward-consistent shapes: args.d_feature=16, args.d_hidden=32,
    # args.n_layers=2, task.n_classes=4, batch=8.
    B, d_feature, d_hidden, n_layers, n_classes = 8, 16, 32, 2, 4

    key = jax.random.PRNGKey(0)
    key, kx = jax.random.split(key)
    x = jax.random.normal(kx, (B, d_feature), jnp.float32)
    params = init_params(key, d_feature, d_hidden, n_layers, n_classes)
    ref = mlp_reference(x, params)

    # Pad / cast the parameters ONCE (hoisted out of the per-call forward).
    params_f32 = pad_params(params, jnp.float32)
    params_bf16 = pad_params(params, jnp.bfloat16)

    fwd = jax.jit(functools.partial(mlp_forward, n_classes=n_classes))

    # f32 path: exact parity with the reference.
    out = jax.block_until_ready(fwd(x, params_f32))
    assert out.shape == (B, n_classes)
    assert jnp.allclose(out, ref, atol=1e-5, rtol=1e-5), "f32 mismatch vs reference"

    # bf16 weights/activations (v6e/v7x MXU-native path), f32 accumulation.
    out_bf16 = jax.block_until_ready(fwd(x, params_bf16))
    assert out_bf16.shape == (B, n_classes)
    assert jnp.allclose(out_bf16, ref, atol=3e-2, rtol=3e-2), "bf16 mismatch vs reference"

    # Larger, non-multiple batch exercises the multi-step grid + padding path.
    B2 = 300
    key, kx2 = jax.random.split(key)
    x2 = jax.random.normal(kx2, (B2, d_feature), jnp.float32)
    out2 = jax.block_until_ready(fwd(x2, params_f32))
    assert out2.shape == (B2, n_classes)
    assert jnp.allclose(out2, mlp_reference(x2, params), atol=1e-5, rtol=1e-5), \
        "tiled-batch mismatch vs reference"

    print("KERNEL_OK")
</pallas_src>

<mosaic_0001>
module attributes {stable_mosaic.version = 11 : i64} {
  func.func @mlp_kernel(%arg0: i32, %arg1: memref<8x128xf32, #tpu.memory_space<vmem>>, %arg2: memref<128x128xf32, #tpu.memory_space<vmem>>, %arg3: memref<1x128xf32, #tpu.memory_space<vmem>>, %arg4: memref<128x128xf32, #tpu.memory_space<vmem>>, %arg5: memref<1x128xf32, #tpu.memory_space<vmem>>, %arg6: memref<128x128xf32, #tpu.memory_space<vmem>>, %arg7: memref<1x128xf32, #tpu.memory_space<vmem>>, %arg8: memref<128x128xf32, #tpu.memory_space<vmem>>, %arg9: memref<1x128xf32, #tpu.memory_space<vmem>>, %arg10: memref<8x128xf32, #tpu.memory_space<vmem>>) attributes {dimension_semantics = [#tpu.dimension_semantics<parallel>], iteration_bounds = array<i64: 1>, scalar_prefetch = 0 : i64, scratch_operands = 0 : i64, tpu.core_type = #tpu.core_type<tc>, window_params = [{transform_indices = @transform_0, window_bounds = array<i64: 8, 128>}, {pipeline_mode = #tpu.pipeline_mode<synchronous>, transform_indices = @transform_1, window_bounds = array<i64: 128, 128>}, {pipeline_mode = #tpu.pipeline_mode<synchronous>, transform_indices = @transform_2, window_bounds = array<i64: 1, 128>}, {pipeline_mode = #tpu.pipeline_mode<synchronous>, transform_indices = @transform_3, window_bounds = array<i64: 128, 128>}, {pipeline_mode = #tpu.pipeline_mode<synchronous>, transform_indices = @transform_4, window_bounds = array<i64: 1, 128>}, {pipeline_mode = #tpu.pipeline_mode<synchronous>, transform_indices = @transform_5, window_bounds = array<i64: 128, 128>}, {pipeline_mode = #tpu.pipeline_mode<synchronous>, transform_indices = @transform_6, window_bounds = array<i64: 1, 128>}, {pipeline_mode = #tpu.pipeline_mode<synchronous>, transform_indices = @transform_7, window_bounds = array<i64: 128, 128>}, {pipeline_mode = #tpu.pipeline_mode<synchronous>, transform_indices = @transform_8, window_bounds = array<i64: 1, 128>}, {transform_indices = @transform_9, window_bounds = array<i64: 8, 128>}]} {
    %c0 = arith.constant 0 : index
    %c0_0 = arith.constant 0 : index
    %0 = vector.load %arg1[%c0, %c0_0] : memref<8x128xf32, #tpu.memory_space<vmem>>, vector<8x128xf32>
    %c0_1 = arith.constant 0 : index
    %c0_2 = arith.constant 0 : index
    %1 = vector.load %arg2[%c0_1, %c0_2] : memref<128x128xf32, #tpu.memory_space<vmem>>, vector<128x128xf32>
    %c0_3 = arith.constant 0 : index
    %c0_4 = arith.constant 0 : index
    %2 = vector.load %arg3[%c0_3, %c0_4] : memref<1x128xf32, #tpu.memory_space<vmem>>, vector<1x128xf32>
    %cst = arith.constant dense<0.000000e+00> : vector<8x128xf32>
    %3 = tpu.matmul %0, %1, %cst {dimension_numbers = #tpu.dot_dimension_numbers<[1], [0], [0], [1], [0, 0, 1, 1], [], []>} : vector<8x128xf32>, vector<128x128xf32>, vector<8x128xf32> -> vector<8x128xf32>
    %4 = vector.broadcast %2 : vector<1x128xf32> to vector<8x128xf32>
    %5 = arith.addf %3, %4 : vector<8x128xf32>
    %cst_5 = arith.constant 0.000000e+00 : f32
    %6 = vector.broadcast %cst_5 : f32 to vector<8x128xf32>
    %7 = arith.maximumf %5, %6 : vector<8x128xf32>
    %c0_6 = arith.constant 0 : index
    %c0_7 = arith.constant 0 : index
    %8 = vector.load %arg4[%c0_6, %c0_7] : memref<128x128xf32, #tpu.memory_space<vmem>>, vector<128x128xf32>
    %c0_8 = arith.constant 0 : index
    %c0_9 = arith.constant 0 : index
    %9 = vector.load %arg5[%c0_8, %c0_9] : memref<1x128xf32, #tpu.memory_space<vmem>>, vector<1x128xf32>
    %cst_10 = arith.constant dense<0.000000e+00> : vector<8x128xf32>
    %10 = tpu.matmul %7, %8, %cst_10 {dimension_numbers = #tpu.dot_dimension_numbers<[1], [0], [0], [1], [0, 0, 1, 1], [], []>} : vector<8x128xf32>, vector<128x128xf32>, vector<8x128xf32> -> vector<8x128xf32>
    %11 = vector.broadcast %9 : vector<1x128xf32> to vector<8x128xf32>
    %12 = arith.addf %10, %11 : vector<8x128xf32>
    %cst_11 = arith.constant 0.000000e+00 : f32
    %13 = vector.broadcast %cst_11 : f32 to vector<8x128xf32>
    %14 = arith.maximumf %12, %13 : vector<8x128xf32>
    %c0_12 = arith.constant 0 : index
    %c0_13 = arith.constant 0 : index
    %15 = vector.load %arg6[%c0_12, %c0_13] : memref<128x128xf32, #tpu.memory_space<vmem>>, vector<128x128xf32>
    %c0_14 = arith.constant 0 : index
    %c0_15 = arith.constant 0 : index
    %16 = vector.load %arg7[%c0_14, %c0_15] : memref<1x128xf32, #tpu.memory_space<vmem>>, vector<1x128xf32>
    %cst_16 = arith.constant dense<0.000000e+00> : vector<8x128xf32>
    %17 = tpu.matmul %14, %15, %cst_16 {dimension_numbers = #tpu.dot_dimension_numbers<[1], [0], [0], [1], [0, 0, 1, 1], [], []>} : vector<8x128xf32>, vector<128x128xf32>, vector<8x128xf32> -> vector<8x128xf32>
    %18 = vector.broadcast %16 : vector<1x128xf32> to vector<8x128xf32>
    %19 = arith.addf %17, %18 : vector<8x128xf32>
    %cst_17 = arith.constant 0.000000e+00 : f32
    %20 = vector.broadcast %cst_17 : f32 to vector<8x128xf32>
    %21 = arith.maximumf %19, %20 : vector<8x128xf32>
    %c0_18 = arith.constant 0 : index
    %c0_19 = arith.constant 0 : index
    %22 = vector.load %arg8[%c0_18, %c0_19] : memref<128x128xf32, #tpu.memory_space<vmem>>, vector<128x128xf32>
    %cst_20 = arith.constant dense<0.000000e+00> : vector<8x128xf32>
    %23 = tpu.matmul %21, %22, %cst_20 {dimension_numbers = #tpu.dot_dimension_numbers<[1], [0], [0], [1], [0, 0, 1, 1], [], []>} : vector<8x128xf32>, vector<128x128xf32>, vector<8x128xf32> -> vector<8x128xf32>
    %c0_21 = arith.constant 0 : index
    %c0_22 = arith.constant 0 : index
    %24 = vector.load %arg9[%c0_21, %c0_22] : memref<1x128xf32, #tpu.memory_space<vmem>>, vector<1x128xf32>
    %25 = vector.broadcast %24 : vector<1x128xf32> to vector<8x128xf32>
    %26 = arith.addf %23, %25 : vector<8x128xf32>
    %27 = arith.negf %26 : vector<8x128xf32>
    %28 = math.exp %27 : vector<8x128xf32>
    %cst_23 = arith.constant 1.000000e+00 : f32
    %29 = vector.broadcast %cst_23 : f32 to vector<8x128xf32>
    %30 = arith.addf %29, %28 : vector<8x128xf32>
    %31 = arith.divf %29, %30 : vector<8x128xf32>
    %c0_24 = arith.constant 0 : index
    %c0_25 = arith.constant 0 : index
    %32 = vector.load %arg10[%c0_24, %c0_25] : memref<8x128xf32, #tpu.memory_space<vmem>>, vector<8x128xf32>
    tpu.vector_store %arg10[%c0_24, %c0_25], %31 {strides = array<i32>} : memref<8x128xf32, #tpu.memory_space<vmem>>, vector<8x128xf32>,
    return
  }
  func.func @transform_0(%arg0: i32) -> (i32, i32) {
    %c0_i32 = arith.constant 0 : i32
    %c0_i32_0 = arith.constant 0 : i32
    return %arg0, %c0_i32 : i32, i32
  }
  func.func @transform_1(%arg0: i32) -> (i32, i32) {
    %c0_i32 = arith.constant 0 : i32
    %c0_i32_0 = arith.constant 0 : i32
    %c0_i32_1 = arith.constant 0 : i32
    return %c0_i32, %c0_i32_0 : i32, i32
  }
  func.func @transform_2(%arg0: i32) -> (i32, i32) {
    %c0_i32 = arith.constant 0 : i32
    %c0_i32_0 = arith.constant 0 : i32
    %c0_i32_1 = arith.constant 0 : i32
    return %c0_i32, %c0_i32_0 : i32, i32
  }
  func.func @transform_3(%arg0: i32) -> (i32, i32) {
    %c0_i32 = arith.constant 0 : i32
    %c0_i32_0 = arith.constant 0 : i32
    %c0_i32_1 = arith.constant 0 : i32
    return %c0_i32, %c0_i32_0 : i32, i32
  }
  func.func @transform_4(%arg0: i32) -> (i32, i32) {
    %c0_i32 = arith.constant 0 : i32
    %c0_i32_0 = arith.constant 0 : i32
    %c0_i32_1 = arith.constant 0 : i32
    return %c0_i32, %c0_i32_0 : i32, i32
  }
  func.func @transform_5(%arg0: i32) -> (i32, i32) {
    %c0_i32 = arith.constant 0 : i32
    %c0_i32_0 = arith.constant 0 : i32
    %c0_i32_1 = arith.constant 0 : i32
    return %c0_i32, %c0_i32_0 : i32, i32
  }
  func.func @transform_6(%arg0: i32) -> (i32, i32) {
    %c0_i32 = arith.constant 0 : i32
    %c0_i32_0 = arith.constant 0 : i32
    %c0_i32_1 = arith.constant 0 : i32
    return %c0_i32, %c0_i32_0 : i32, i32
  }
  func.func @transform_7(%arg0: i32) -> (i32, i32) {
    %c0_i32 = arith.constant 0 : i32
    %c0_i32_0 = arith.constant 0 : i32
    %c0_i32_1 = arith.constant 0 : i32
    return %c0_i32, %c0_i32_0 : i32, i32
  }
  func.func @transform_8(%arg0: i32) -> (i32, i32) {
    %c0_i32 = arith.constant 0 : i32
    %c0_i32_0 = arith.constant 0 : i32
    %c0_i32_1 = arith.constant 0 : i32
    return %c0_i32, %c0_i32_0 : i32, i32
  }
  func.func @transform_9(%arg0: i32) -> (i32, i32) {
    %c0_i32 = arith.constant 0 : i32
    %c0_i32_0 = arith.constant 0 : i32
    return %arg0, %c0_i32 : i32, i32
  }
}

</mosaic_0001>

<bundles_post_ra>
// kernel: mlp_forward.1
= control target key start
LH: loop header
LB: loop body
LE: loop exit
PB: predicated region body
PF: predicated region fallthrough
CT: control target
= control target key end

     0   :  { %14 = vsyncpa [#allocation3], 0  ;;  %s960_s0 = inlined_call_operand.vmem [shape: f32[8,128], index: 0, kind: input, shape index: {}]   ;;  %s961_s1 = inlined_call_operand.hbm [shape: f32[128,128], index: 1, kind: input, shape index: {}]   ;;  %s962_s2 = inlined_call_operand.vmem [shape: f32[1,128], index: 2, kind: input, shape index: {}]   ;;  %s963_s3 = inlined_call_operand.hbm [shape: f32[128,128], index: 3, kind: input, shape index: {}]   ;;  %s964_s4 = inlined_call_operand.vmem [shape: f32[1,128], index: 4, kind: input, shape index: {}]   ;;  %s965_s5 = inlined_call_operand.hbm [shape: f32[128,128], index: 5, kind: input, shape index: {}]   ;;  %s966_s6 = inlined_call_operand.vmem [shape: f32[1,128], index: 6, kind: input, shape index: {}]   ;;  %s967_s7 = inlined_call_operand.hbm [shape: f32[128,128], index: 7, kind: input, shape index: {}]   ;;  %s968_s8 = inlined_call_operand.vmem [shape: f32[1,128], index: 8, kind: input, shape index: {}]   ;;  %s969_s9 = inlined_call_operand.vmem [shape: f32[8,128], index: 9, kind: output, shape index: {}]  }
   0x1   :  { %15 = vsyncpa [#allocation5], 0 }
   0x2   :  { %16 = vsyncpa [#allocation8], 0  ;;  %s788_s30 = smov [#allocation4]   ;;  %s789_s11 = smov [#allocation2]  }
   0x3   :  { %s38_s10 = sshll.u32 %s788_s30, 4  ;;  %s24_s12 = sshll.u32 %s789_s11, 4  ;;  %s39_s10 = int_to_ptr.vmem [resolvable:$true] %s38_s10  ;;  %s25_s12 = int_to_ptr.vmem [resolvable:$true] %s24_s12 }
   0x4   :  { %s710_s13 = scalar_lea.vmem %s39_s10, 2048  ;;  %p715_p1 = scmp.lt.s32.totalorder %s39_s10, %s39_s10 }
   0x5   :  { %p711_p0 = scmp.ne.s32.totalorder %s39_s10, %s710_s13  ;;  %p716_p2 = scmp.lt.s32.totalorder %s710_s13, %s710_s13 }
   0x7   :  { %p717_p3 = por %p716_p2, %p715_p1 }
   0x9   :  { %p718_p4 = pnand %p717_p3, %p711_p0 }
   0xb   :  { %721 = shalt.err (!%p718_p4)
}
   0xc   :  { %s790_s14 = smov 128   ;;  %s791_s15 = smov 8  }
   0xd   :  { %44 = dma.hbm_to_vmem [thread:$0]  %s963_s3, 2048, %s39_s10, [#allocation5], %s790_s14, %s790_s14, %s791_s15  }
   0xe   :  { %s730_s18 = scalar_lea.vmem %s25_s12, 2048  ;;  %p735_p6 = scmp.lt.s32.totalorder %s25_s12, %s25_s12 }
   0xf   :  { %p731_p5 = scmp.ne.s32.totalorder %s25_s12, %s730_s18  ;;  %p736_p7 = scmp.lt.s32.totalorder %s730_s18, %s730_s18 }
  0x11   :  { %p737_p8 = por %p736_p7, %p735_p6 }
  0x13   :  { %p738_p9 = pnand %p737_p8, %p731_p5 }
  0x15   :  { %741 = shalt.err (!%p738_p9)
}
  0x16   :  { %30 = dma.hbm_to_vmem [thread:$0]  %s961_s1, 2048, %s25_s12, [#allocation3], %s790_s14, %s790_s14, %s791_s15  }
  0x17   :  { %s792_s21 = smov [#allocation6]   ;;  %s793_s23 = smov [#allocation7]  }
  0x18   :  { %s52_s22 = sshll.u32 %s792_s21, 4  ;;  %s66_s24 = sshll.u32 %s793_s23, 4  ;;  %s53_s22 = int_to_ptr.vmem [resolvable:$true] %s52_s22  ;;  %s67_s24 = int_to_ptr.vmem [resolvable:$true] %s66_s24 }
  0x19   :  { %s750_s3 = scalar_lea.vmem %s53_s22, 2048  ;;  %p755_p11 = scmp.lt.s32.totalorder %s53_s22, %s53_s22 }
  0x1a   :  { %p751_p10 = scmp.ne.s32.totalorder %s53_s22, %s750_s3  ;;  %p756_p12 = scmp.lt.s32.totalorder %s750_s3, %s750_s3 }
  0x1c   :  { %p757_p13 = por %p756_p12, %p755_p11 }
  0x1e   :  { %p758_p0 = pnand %p757_p13, %p751_p10 }
  0x20   :  { %761 = shalt.err (!%p758_p0)
}
  0x21   :  { %58 = dma.hbm_to_vmem [thread:$0]  %s965_s5, 2048, %s53_s22, [#allocation5], %s790_s14, %s790_s14, %s791_s15  }
  0x22   :  { %s770_s1 = scalar_lea.vmem %s67_s24, 2048  ;;  %p775_p2 = scmp.lt.s32.totalorder %s67_s24, %s67_s24 }
  0x23   :  { %p771_p1 = scmp.ne.s32.totalorder %s67_s24, %s770_s1  ;;  %p776_p3 = scmp.lt.s32.totalorder %s770_s1, %s770_s1 }
  0x25   :  { %p777_p4 = por %p776_p3, %p775_p2 }
  0x27   :  { %p778_p5 = pnand %p777_p4, %p771_p1 }
  0x29   :  { %781 = shalt.err (!%p778_p5)
}
  0x2a   :  { %72 = dma.hbm_to_vmem [thread:$0]  %s967_s7, 2048, %s67_s24, [#allocation8], %s790_s14, %s790_s14, %s791_s15  }
  0x2b   :  { %782 = dma.done.wait [#allocation3], 2048  }
  0x2c   :  { %783 = vsyncadd [#allocation3], 4294965248 }
  0x2d   :  { %784 = dma.done.wait [#allocation5], 4096  }
  0x2e   :  { %785 = vsyncadd [#allocation5], 4294963200 }
  0x2f   :  { %786 = dma.done.wait [#allocation8], 2048  }
  0x30   :  { %787 = vsyncadd [#allocation8], 4294965248  ;;  %v794_v0 = vmov 0.0   ;;  %vm795_vm0 = vmmov 0   ;;  %v103_v1 = vld [vmem:[#allocation2 + $0x78] sm:$0xff]  ;;  %v102_v2 = vld [vmem:[#allocation2 + $0x70] sm:$0xff] }
  0x31   :  { %550 = vmatprep.subr.mxu0 %v794_v0  ;;  %582 = vmatprep.mubr.msk.f32.mxu0 %vm795_vm0, %v794_v0  ;;  %v101_v3 = vld [vmem:[#allocation2 + $0x68] sm:$0xff]  ;;  %v100_v4 = vld [vmem:[#allocation2 + $0x60] sm:$0xff]  ;;  %v197_v5 = vld [vmem:[#allocation4 + $0x78] sm:$0xff] }
  0x32   :  { %585 = vmatprep.subr.mxu1 %v794_v0  ;;  %617 = vmatprep.mubr.msk.f32.mxu1 %vm795_vm0, %v794_v0  ;;  %v99_v6 = vld [vmem:[#allocation2 + $0x58] sm:$0xff]  ;;  %v196_v7 = vld [vmem:[#allocation4 + $0x70] sm:$0xff]  ;;  %v195_v8 = vld [vmem:[#allocation4 + $0x68] sm:$0xff] }
  0x33   :  { %551 = vmatpush3.msra.mxu0 %v103_v1  ;;  %586 = vmatpush3.msra.mxu1 %v197_v5  ;;  %v98_v9 = vld [vmem:[#allocation2 + $0x50] sm:$0xff]  ;;  %v194_v10 = vld [vmem:[#allocation4 + $0x60] sm:$0xff]  ;;  %v97_v11 = vld [vmem:[#allocation2 + $0x48] sm:$0xff] }
  0x34   :  { %552 = vmatprep.subr.mxu0 %v794_v0  ;;  %587 = vmatprep.subr.mxu1 %v794_v0  ;;  %v193_v12 = vld [vmem:[#allocation4 + $0x58] sm:$0xff]  ;;  %v96_v13 = vld [vmem:[#allocation2 + $0x40] sm:$0xff]  ;;  %v192_v14 = vld [vmem:[#allocation4 + $0x50] sm:$0xff] }
  0x35   :  { %553 = vmatpush3.msra.mxu0 %v102_v2  ;;  %588 = vmatpush3.msra.mxu1 %v196_v7  ;;  %v95_v15 = vld [vmem:[#allocation2 + $0x38] sm:$0xff]  ;;  %v191_v16 = vld [vmem:[#allocation4 + $0x48] sm:$0xff]  ;;  %v94_v17 = vld [vmem:[#allocation2 + $0x30] sm:$0xff] }
  0x36   :  { %554 = vmatprep.subr.mxu0 %v794_v0  ;;  %589 = vmatprep.subr.mxu1 %v794_v0  ;;  %v190_v18 = vld [vmem:[#allocation4 + $0x40] sm:$0xff]  ;;  %v93_v19 = vld [vmem:[#allocation2 + $0x28] sm:$0xff]  ;;  %v189_v20 = vld [vmem:[#allocation4 + $0x38] sm:$0xff] }
  0x37   :  { %555 = vmatpush3.msra.mxu0 %v101_v3  ;;  %590 = vmatpush3.msra.mxu1 %v195_v8  ;;  %v92_v21 = vld [vmem:[#allocation2 + $0x20] sm:$0xff]  ;;  %v188_v22 = vld [vmem:[#allocation4 + $0x30] sm:$0xff]  ;;  %v91_v23 = vld [vmem:[#allocation2 + $0x18] sm:$0xff] }
  0x38   :  { %556 = vmatprep.subr.mxu0 %v794_v0  ;;  %591 = vmatprep.subr.mxu1 %v794_v0  ;;  %v187_v24 = vld [vmem:[#allocation4 + $0x28] sm:$0xff]  ;;  %v90_v25 = vld [vmem:[#allocation2 + $0x10] sm:$0xff]  ;;  %v186_v26 = vld [vmem:[#allocation4 + $0x20] sm:$0xff] }
  0x39   :  { %557 = vmatpush3.msra.mxu0 %v100_v4  ;;  %592 = vmatpush3.msra.mxu1 %v194_v10  ;;  %v89_v27 = vld [vmem:[#allocation2 + $0x8] sm:$0xff]  ;;  %v185_v28 = vld [vmem:[#allocation4 + $0x18] sm:$0xff]  ;;  %v88_v29 = vld [vmem:[#allocation2] sm:$0xff] }
  0x3a   :  { %558 = vmatprep.subr.mxu0 %v794_v0  ;;  %593 = vmatprep.subr.mxu1 %v794_v0  ;;  %v87_v30 = vld [vmem:[%s960_s0] sm:$0xff]  ;;  %v184_v31 = vld [vmem:[#allocation4 + $0x10] sm:$0xff]  ;;  %v183_v32 = vld [vmem:[#allocation4 + $0x8] sm:$0xff] }
  0x3b   :  { %559 = vmatpush3.msra.mxu0 %v99_v6  ;;  %594 = vmatpush3.msra.mxu1 %v193_v12  ;;  %v182_v33 = vld [vmem:[#allocation4] sm:$0xff]  ;;  %v291_v34 = vld [vmem:[#allocation6 + $0x78] sm:$0xff]  ;;  %v290_v35 = vld [vmem:[#allocation6 + $0x70] sm:$0xff] }
  0x3c   :  { %560 = vmatprep.subr.mxu0 %v794_v0  ;;  %595 = vmatprep.subr.mxu1 %v794_v0  ;;  %v289_v36 = vld [vmem:[#allocation6 + $0x68] sm:$0xff]  ;;  %v288_v37 = vld [vmem:[#allocation6 + $0x60] sm:$0xff]  ;;  %v287_v38 = vld [vmem:[#allocation6 + $0x58] sm:$0xff] }
  0x3d   :  { %561 = vmatpush3.msra.mxu0 %v98_v9  ;;  %596 = vmatpush3.msra.mxu1 %v192_v14  ;;  %v286_v39 = vld [vmem:[#allocation6 + $0x50] sm:$0xff]  ;;  %v285_v40 = vld [vmem:[#allocation6 + $0x48] sm:$0xff]  ;;  %v284_v41 = vld [vmem:[#allocation6 + $0x40] sm:$0xff] }
  0x3e   :  { %562 = vmatprep.subr.mxu0 %v794_v0  ;;  %597 = vmatprep.subr.mxu1 %v794_v0  ;;  %v283_v42 = vld [vmem:[#allocation6 + $0x38] sm:$0xff]  ;;  %v282_v43 = vld [vmem:[#allocation6 + $0x30] sm:$0xff]  ;;  %v281_v44 = vld [vmem:[#allocation6 + $0x28] sm:$0xff] }
  0x3f   :  { %563 = vmatpush3.msra.mxu0 %v97_v11  ;;  %598 = vmatpush3.msra.mxu1 %v191_v16  ;;  %v280_v45 = vld [vmem:[#allocation6 + $0x20] sm:$0xff]  ;;  %v279_v46 = vld [vmem:[#allocation6 + $0x18] sm:$0xff]  ;;  %v278_v52 = vld [vmem:[#allocation6 + $0x10] sm:$0xff] }
  0x40   :  { %564 = vmatprep.subr.mxu0 %v794_v0  ;;  %599 = vmatprep.subr.mxu1 %v794_v0  ;;  %v477_v47 = vld [vmem:[%s962_s2] ss:$0 sm:$0xff]  ;;  %v277_v53 = vld [vmem:[#allocation6 + $0x8] sm:$0xff]  ;;  %v385_v55 = vld [vmem:[#allocation7 + $0x78] sm:$0xff] }
  0x41   :  { %565 = vmatpush3.msra.mxu0 %v96_v13  ;;  %600 = vmatpush3.msra.mxu1 %v190_v18  ;;  %v276_v54 = vld [vmem:[#allocation6] sm:$0xff]  ;;  %v384_v56 = vld [vmem:[#allocation7 + $0x70] sm:$0xff]  ;;  %v383_v57 = vld [vmem:[#allocation7 + $0x68] sm:$0xff] }
  0x42   :  { %566 = vmatprep.subr.mxu0 %v794_v0  ;;  %601 = vmatprep.subr.mxu1 %v794_v0  ;;  %v382_v58 = vld [vmem:[#allocation7 + $0x60] sm:$0xff]  ;;  %v381_v59 = vld [vmem:[#allocation7 + $0x58] sm:$0xff]  ;;  %v380_v60 = vld [vmem:[#allocation7 + $0x50] sm:$0xff] }
  0x43   :  { %567 = vmatpush3.msra.mxu0 %v95_v15  ;;  %602 = vmatpush3.msra.mxu1 %v189_v20  ;;  %v379_v61 = vld [vmem:[#allocation7 + $0x48] sm:$0xff]  ;;  %v378_v62 = vld [vmem:[#allocation7 + $0x40] sm:$0xff]  ;;  %v377_v63 = vld [vmem:[#allocation7 + $0x38] sm:$0xff] }
  0x44   :  { %568 = vmatprep.subr.mxu0 %v794_v0  ;;  %603 = vmatprep.subr.mxu1 %v794_v0  ;;  %v376_v1 = vld [vmem:[#allocation7 + $0x30] sm:$0xff]  ;;  %v375_v2 = vld [vmem:[#allocation7 + $0x28] sm:$0xff]  ;;  %v374_v3 = vld [vmem:[#allocation7 + $0x20] sm:$0xff] }
  0x45   :  { %569 = vmatpush3.msra.mxu0 %v94_v17  ;;  %604 = vmatpush3.msra.mxu1 %v188_v22  ;;  %v373_v4 = vld [vmem:[#allocation7 + $0x18] sm:$0xff]  ;;  %v478_v5 = vld [vmem:[%s964_s4] ss:$0 sm:$0xff]  ;;  %v372_v10 = vld [vmem:[#allocation7 + $0x10] sm:$0xff] }
  0x46   :  { %570 = vmatprep.subr.mxu0 %v794_v0  ;;  %605 = vmatprep.subr.mxu1 %v794_v0  ;;  %v371_v11 = vld [vmem:[#allocation7 + $0x8] sm:$0xff]  ;;  %v370_v12 = vld [vmem:[#allocation7] sm:$0xff] }
  0x47   :  { %571 = vmatpush3.msra.mxu0 %v93_v19  ;;  %606 = vmatpush3.msra.mxu1 %v187_v24  ;;  %v479_v13 = vld [vmem:[%s966_s6] ss:$0 sm:$0xff] }
  0x48   :  { %572 = vmatprep.subr.mxu0 %v794_v0  ;;  %607 = vmatprep.subr.mxu1 %v794_v0  ;;  %v480_v18 = vld [vmem:[%s968_s8] ss:$0 sm:$0xff] }
  0x49   :  { %573 = vmatpush3.msra.mxu0 %v92_v21  ;;  %608 = vmatpush3.msra.mxu1 %v186_v26 }
  0x4a   :  { %574 = vmatprep.subr.mxu0 %v794_v0  ;;  %609 = vmatprep.subr.mxu1 %v794_v0 }
  0x4b   :  { %575 = vmatpush3.msra.mxu0 %v91_v23  ;;  %610 = vmatpush3.msra.mxu1 %v185_v28 }
  0x4c   :  { %576 = vmatprep.subr.mxu0 %v794_v0  ;;  %611 = vmatprep.subr.mxu1 %v794_v0 }
  0x4d   :  { %577 = vmatpush3.msra.mxu0 %v90_v25  ;;  %612 = vmatpush3.msra.mxu1 %v184_v31 }
  0x4e   :  { %578 = vmatprep.subr.mxu0 %v794_v0  ;;  %613 = vmatprep.subr.mxu1 %v794_v0 }
  0x4f   :  { %579 = vmatpush3.msra.mxu0 %v89_v27  ;;  %614 = vmatpush3.msra.mxu1 %v183_v32 }
  0x50   :  { %580 = vmatprep.subr.mxu0 %v794_v0  ;;  %615 = vmatprep.subr.mxu1 %v794_v0 }
  0x51   :  { %581 = vmatpush3.msra.mxu0 %v88_v29  ;;  %616 = vmatpush3.msra.mxu1 %v182_v33 }
  0x52   :  { %583 = vmatmul.mubr.f32.vlgmr.msra.gmra.mxu0 %v87_v30  ;;  %620 = vmatprep.subr.mxu0 %v794_v0 }
  0x53   :  { %652 = vmatprep.mubr.msk.f32.mxu0 %vm795_vm0, %v794_v0  ;;  %655 = vmatprep.subr.mxu1 %v794_v0 }
  0x54   :  { %621 = vmatpush3.msra.mxu0 %v291_v34 }
  0x55   :  { %622 = vmatprep.subr.mxu0 %v794_v0 }
  0x56   :  { %623 = vmatpush3.msra.mxu0 %v290_v35 }
  0x57   :  { %624 = vmatprep.subr.mxu0 %v794_v0 }
  0x58   :  { %625 = vmatpush3.msra.mxu0 %v289_v36 }
  0x59   :  { %626 = vmatprep.subr.mxu0 %v794_v0 }
  0x5a   :  { %627 = vmatpush3.msra.mxu0 %v288_v37 }
  0x5b   :  { %628 = vmatprep.subr.mxu0 %v794_v0 }
  0x5c   :  { %629 = vmatpush3.msra.mxu0 %v287_v38 }
  0x5d   :  { %630 = vmatprep.subr.mxu0 %v794_v0 }
  0x5e   :  { %631 = vmatpush3.msra.mxu0 %v286_v39 }
  0x5f   :  { %632 = vmatprep.subr.mxu0 %v794_v0 }
  0x60   :  { %633 = vmatpush3.msra.mxu0 %v285_v40 }
  0x61   :  { %634 = vmatprep.subr.mxu0 %v794_v0 }
  0x62   :  { %635 = vmatpush3.msra.mxu0 %v284_v41 }
  0x63   :  { %636 = vmatprep.subr.mxu0 %v794_v0 }
  0x64   :  { %637 = vmatpush3.msra.mxu0 %v283_v42 }
  0x65   :  { %638 = vmatprep.subr.mxu0 %v794_v0 }
  0x66   :  { %639 = vmatpush3.msra.mxu0 %v282_v43 }
  0x67   :  { %640 = vmatprep.subr.mxu0 %v794_v0 }
  0x68   :  { %641 = vmatpush3.msra.mxu0 %v281_v44 }
  0x69   :  { %642 = vmatprep.subr.mxu0 %v794_v0 }
  0x6a   :  { %643 = vmatpush3.msra.mxu0 %v280_v45 }
  0x6b   :  { %644 = vmatprep.subr.mxu0 %v794_v0 }
  0x6c   :  { %645 = vmatpush3.msra.mxu0 %v279_v46 }
  0x6d   :  { %646 = vmatprep.subr.mxu0 %v794_v0 }
  0x6e   :  { %647 = vmatpush3.msra.mxu0 %v278_v52 }
  0x6f   :  { %648 = vmatprep.subr.mxu0 %v794_v0 }
  0x70   :  { %649 = vmatpush3.msra.mxu0 %v277_v53 }
  0x71   :  { %650 = vmatprep.subr.mxu0 %v794_v0 }
  0x72   :  { %651 = vmatpush3.msra.mxu0 %v276_v54 }
 0x112   :  { %v177_v48 = vpop.f32.mrf.mxu0 }
 0x113   :  { %v178_v49 = vadd.f32 %v477_v47, %v177_v48 }
 0x114   :  { %v584_v50 = vpop.f32.mrf.mxu0 }
 0x115   :  { %v181_v51 = vmax.f32 %v178_v49, 0.0 }
 0x117   :  { %618 = vmatmul.mubr.f32.vlgmr.msra.gmra.mxu1 %v181_v51 }
 0x118   :  { %687 = vmatprep.mubr.msk.f32.mxu1 %vm795_vm0, %v794_v0  ;;  %656 = vmatpush3.msra.mxu1 %v385_v55 }
 0x119   :  { %657 = vmatprep.subr.mxu1 %v794_v0 }
 0x11a   :  { %658 = vmatpush3.msra.mxu1 %v384_v56 }
 0x11b   :  { %659 = vmatprep.subr.mxu1 %v794_v0 }
 0x11c   :  { %660 = vmatpush3.msra.mxu1 %v383_v57 }
 0x11d   :  { %661 = vmatprep.subr.mxu1 %v794_v0 }
 0x11e   :  { %662 = vmatpush3.msra.mxu1 %v382_v58 }
 0x11f   :  { %663 = vmatprep.subr.mxu1 %v794_v0 }
 0x120   :  { %664 = vmatpush3.msra.mxu1 %v381_v59 }
 0x121   :  { %665 = vmatprep.subr.mxu1 %v794_v0 }
 0x122   :  { %666 = vmatpush3.msra.mxu1 %v380_v60 }
 0x123   :  { %667 = vmatprep.subr.mxu1 %v794_v0 }
 0x124   :  { %668 = vmatpush3.msra.mxu1 %v379_v61 }
 0x125   :  { %669 = vmatprep.subr.mxu1 %v794_v0 }
 0x126   :  { %670 = vmatpush3.msra.mxu1 %v378_v62 }
 0x127   :  { %671 = vmatprep.subr.mxu1 %v794_v0 }
 0x128   :  { %672 = vmatpush3.msra.mxu1 %v377_v63 }
 0x129   :  { %673 = vmatprep.subr.mxu1 %v794_v0 }
 0x12a   :  { %674 = vmatpush3.msra.mxu1 %v376_v1 }
 0x12b   :  { %675 = vmatprep.subr.mxu1 %v794_v0 }
 0x12c   :  { %676 = vmatpush3.msra.mxu1 %v375_v2 }
 0x12d   :  { %677 = vmatprep.subr.mxu1 %v794_v0 }
 0x12e   :  { %678 = vmatpush3.msra.mxu1 %v374_v3 }
 0x12f   :  { %679 = vmatprep.subr.mxu1 %v794_v0 }
 0x130   :  { %680 = vmatpush3.msra.mxu1 %v373_v4 }
 0x131   :  { %681 = vmatprep.subr.mxu1 %v794_v0 }
 0x132   :  { %682 = vmatpush3.msra.mxu1 %v372_v10 }
 0x133   :  { %683 = vmatprep.subr.mxu1 %v794_v0 }
 0x134   :  { %684 = vmatpush3.msra.mxu1 %v371_v11 }
 0x135   :  { %685 = vmatprep.subr.mxu1 %v794_v0 }
 0x136   :  { %686 = vmatpush3.msra.mxu1 %v370_v12 }
 0x1d7   :  { %v271_v6 = vpop.f32.mrf.mxu1 }
 0x1d8   :  { %v272_v7 = vadd.f32 %v478_v5, %v271_v6 }
 0x1d9   :  { %v619_v8 = vpop.f32.mrf.mxu1 }
 0x1da   :  { %v275_v9 = vmax.f32 %v272_v7, 0.0 }
 0x1dc   :  { %653 = vmatmul.mubr.f32.vlgmr.msra.gmra.mxu0 %v275_v9 }
 0x29c   :  { %v365_v14 = vpop.f32.mrf.mxu0 }
 0x29d   :  { %v366_v15 = vadd.f32 %v479_v13, %v365_v14 }
 0x29e   :  { %v654_v16 = vpop.f32.mrf.mxu0 }
 0x29f   :  { %v369_v17 = vmax.f32 %v366_v15, 0.0 }
 0x2a1   :  { %688 = vmatmul.mubr.f32.vlgmr.msra.gmra.mxu1 %v369_v17 }
 0x361   :  { %v459_v19 = vpop.f32.mrf.mxu1 }
 0x362   :  { %v460_v20 = vadd.f32 %v480_v18, %v459_v19 }
 0x363   :  { %v689_v21 = vpop.f32.mrf.mxu1 }
 0x364   :  { %v481_v22 = vmul.f32 -1.442695, %v460_v20 }
 0x366   :  { %698 = vpow2.f32 %v481_v22 }
 0x373   :  { %v699_v0 = vpop.eup %698 }
 0x374   :  { %v466_v23 = vadd.f32 1.0, %v699_v0 }
 0x376   :  { %700 = vrcp.f32 %v466_v23 }
 0x383   :  { %v701_v24 = vpop.eup %700 }
 0x384   :  { %469 = vst [vmem:[%s969_s9] sm:$0xff] %v701_v24 }
 0x385   :  { %474 = vsyncpa [#allocation3], 1 }
 0x386   :  { %475 = vsyncpa [#allocation5], 1 }
 0x387   :  { %476 = vsyncpa [#allocation8], 1 }

</bundles_post_ra>
